<compile_context>
chip_gen: v7x
topology: tpu7x:2x2x1
jax: 0.10.0
libtpu: 0.0.40
codegen_flags: <defaults>
</compile_context>

<pallas_src>
import jax
import jax.numpy as jnp
from jax import lax
from jax.experimental import pallas as pl
from jax.experimental.pallas import tpu as pltpu


def _round_up(a, b):
    return (a + b - 1) // b * b


def _masked_conv_gemm_single_k(w_ref, p_ref, b_ref, o_ref):
    """K fits in one tile: out = W_masked @ patches + bias, no accumulator.

    w_ref: (Cout_p, tk) bf16   p_ref: (tk, ts) bf16
    b_ref: (Cout_p, 1)  f32    o_ref: (Cout_p, ts) f32  (ts on the lane axis)
    """
    o_ref[...] = (jnp.dot(w_ref[...], p_ref[...],
                          preferred_element_type=jnp.float32)
                  + b_ref[...]).astype(o_ref.dtype)


def _masked_conv_gemm_multi_k(w_ref, p_ref, b_ref, o_ref, acc_ref):
    """General case: f32 VMEM accumulator resident across the K (last) grid axis."""
    k = pl.program_id(2)

    @pl.when(k == 0)
    def _():
        acc_ref[...] = jnp.zeros_like(acc_ref)

    acc_ref[...] += jnp.dot(w_ref[...], p_ref[...],
                            preferred_element_type=jnp.float32)

    @pl.when(k == pl.num_programs(2) - 1)
    def _():
        o_ref[...] = (acc_ref[...] + b_ref[...]).astype(o_ref.dtype)


def _im2col_nks(x, kh, kw, pad):
    """NCHW im2col (stride 1) -> (N, K, S) with K = Cin*kh*kw (matching
    weight.reshape(Cout, Cin*kh*kw) ordering) and S = OH*OW.  No transpose."""
    n, c, h, w = x.shape
    oh, ow = h + 2 * pad - kh + 1, w + 2 * pad - kw + 1
    xp = jnp.pad(x, ((0, 0), (0, 0), (pad, pad), (pad, pad)))
    cols = [xp[:, :, i:i + oh, j:j + ow] for i in range(kh) for j in range(kw)]
    patches = jnp.stack(cols, axis=2)                      # (N, Cin, kh*kw, OH, OW)
    return patches.reshape(n, c * kh * kw, oh * ow), oh, ow


def pruner_wrapped_conv2d(x, weight, weight_mask, bias, bias_mask,
                          *, pad=1, tm=1024, tk_max=1024,
                          compute_dtype=jnp.bfloat16):
    """JAX/Pallas equivalent of PrunerModuleWrapper.forward for a Conv2d module
    (stride=1, symmetric padding).  Mask application + conv fused as one GEMM."""
    n, cin, h, w = x.shape
    cout, _, kh, kw = weight.shape
    k_full = cin * kh * kw

    # --- PrunerModuleWrapper.forward: mask the parameters (hoisted; XLA fuses
    # this into a single elementwise pass instead of per-tile VPU work).
    w2d = (weight * weight_mask).reshape(cout, k_full)
    if bias is not None:
        b2d = (bias * bias_mask).reshape(cout, 1).astype(jnp.float32)
    else:
        b2d = jnp.zeros((cout, 1), dtype=jnp.float32)

    # --- im2col, (N, K, S) layout so no host-side transpose is ever needed.
    patches, oh, ow = _im2col_nks(x, kh, kw, pad)
    s = oh * ow

    # --- Padding / tiling.
    cout_p = _round_up(cout, 8)                  # clean f32 sublane dimension
    k_pad = _round_up(k_full, 128)               # clean MXU / lane-aligned K
    tk = min(_round_up(tk_max, 128), k_pad)
    k_pad = _round_up(k_full, tk)
    k_tiles = k_pad // tk

    ts = _round_up(min(tm, _round_up(s, 128)), 128)   # lane tile (big = fewer steps)
    # Keep >=2 parallel tiles so the v7x second TensorCore isn't idle.
    if n * pl.cdiv(s, ts) < 2 and s > 128:
        ts = _round_up(pl.cdiv(s, 2), 128)
    s_pad = _round_up(s, ts)
    s_tiles = s_pad // ts

    if cout_p != cout:
        w2d = jnp.pad(w2d, ((0, cout_p - cout), (0, 0)))
        b2d = jnp.pad(b2d, ((0, cout_p - cout), (0, 0)))
    if k_pad != k_full:
        w2d = jnp.pad(w2d, ((0, 0), (0, k_pad - k_full)))
        patches = jnp.pad(patches, ((0, 0), (0, k_pad - k_full), (0, 0)))
    if s_pad != s:
        patches = jnp.pad(patches, ((0, 0), (0, 0), (0, s_pad - s)))

    # bf16 inputs halve the dominant HBM stream; accumulation stays f32 on MXU.
    w2d = w2d.astype(compute_dtype)
    patches = patches.astype(compute_dtype)

    # --- Single-K fast path: no accumulator scratch, no pl.when branches.
    if k_tiles == 1:
        kernel = _masked_conv_gemm_single_k
        scratch = []
    else:
        kernel = _masked_conv_gemm_multi_k
        scratch = [pltpu.VMEM((cout_p, ts), jnp.float32)]

    # --- VMEM budget from the actual tile footprint, generation-aware cap.
    itemsize = jnp.dtype(compute_dtype).itemsize
    per_step = (tk * ts * itemsize            # patches tile
                + cout_p * tk * itemsize      # weight tile
                + cout_p * 4                  # bias
                + cout_p * ts * 4)            # output tile
    acc_bytes = cout_p * ts * 4 if k_tiles > 1 else 0
    try:
        vmem_cap = pltpu.get_tpu_info().vmem_capacity_bytes
    except Exception:
        vmem_cap = 64 * 1024 * 1024           # v7x-safe fallback
    vmem_limit = int(min(max(3 * per_step + acc_bytes + (2 << 20), 16 << 20),
                         int(vmem_cap * 3 // 4)))

    grid = (n, s_tiles, k_tiles)              # reduction (K) axis last

    out3d = pl.pallas_call(
        kernel,
        out_shape=jax.ShapeDtypeStruct((n, cout_p, s_pad), jnp.float32),
        grid_spec=pltpu.PrefetchScalarGridSpec(
            num_scalar_prefetch=0,
            grid=grid,
            in_specs=[
                pl.BlockSpec((cout_p, tk), lambda b, i, k: (0, k)),      # masked W
                pl.BlockSpec((None, tk, ts), lambda b, i, k: (b, k, i)),  # patches
                pl.BlockSpec((cout_p, 1), lambda b, i, k: (0, 0)),       # masked bias
            ],
            # FIXED index_map: spatial tile index on the last (lane) block axis.
            out_specs=pl.BlockSpec((None, cout_p, ts), lambda b, i, k: (b, 0, i)),
            scratch_shapes=scratch,
        ),
        compiler_params=pltpu.CompilerParams(
            dimension_semantics=("parallel", "parallel", "arbitrary"),
            vmem_limit_bytes=vmem_limit,
        ),
    )(w2d, patches, b2d)

    # Crop padding; reshape (N, Cout, OH*OW) -> (N, Cout, OH, OW) is layout-free.
    return out3d[:, :cout, :s].reshape(n, cout, oh, ow)


if __name__ == "__main__":
    key = jax.random.PRNGKey(0)
    kx, kw_, kb = jax.random.split(key, 3)

    # Wrapped module: Conv2d(in=4, out=8, kernel=3, stride=1, padding=1, bias=True)
    N, Cin, H, W = 2, 4, 16, 16
    Cout, KH, KW = 8, 3, 3

    x = jax.random.normal(kx, (N, Cin, H, W), dtype=jnp.float32)
    weight = jax.random.normal(kw_, (Cout, Cin, KH, KW), dtype=jnp.float32) * 0.1
    bias = jax.random.normal(kb, (Cout,), dtype=jnp.float32) * 0.1

    # Buffers registered by PrunerModuleWrapper.__init__ are all-ones; a pruner
    # later overwrites them.  Use a deterministic structured mask (prune every
    # other output channel) so the masking path is exercised.
    ch_mask = (jnp.arange(Cout) % 2).astype(jnp.float32)              # (Cout,)
    weight_mask = jnp.broadcast_to(ch_mask[:, None, None, None], weight.shape)
    bias_mask = ch_mask

    y = pruner_wrapped_conv2d(x, weight, weight_mask, bias, bias_mask, pad=1)
    y = jax.block_until_ready(y)

    # Reference: masked conv with the same bf16 rounding of the GEMM operands
    # (f32 accumulation), so only summation order differs from the kernel.
    xq = x.astype(jnp.bfloat16).astype(jnp.float32)
    wq = (weight * weight_mask).astype(jnp.bfloat16).astype(jnp.float32)
    b_m = bias * bias_mask
    y_ref = lax.conv_general_dilated(
        xq, wq, window_strides=(1, 1), padding=((1, 1), (1, 1)),
        dimension_numbers=("NCHW", "OIHW", "NCHW"),
        precision=lax.Precision.HIGHEST,
    ) + b_m[None, :, None, None]

    assert y.shape == (N, Cout, H, W)
    assert jnp.allclose(y, y_ref, atol=2e-3, rtol=2e-3)
    print("KERNEL_OK")
</pallas_src>

<mosaic_0001>
module attributes {stable_mosaic.version = 11 : i64} {
  func.func @_masked_conv_gemm_single_k(%arg0: i32, %arg1: i32, %arg2: i32, %arg3: memref<8x128xbf16, #tpu.memory_space<vmem>>, %arg4: memref<1x128x256xbf16, #tpu.memory_space<vmem>>, %arg5: memref<8x1xf32, #tpu.memory_space<vmem>>, %arg6: memref<1x8x256xf32, #tpu.memory_space<vmem>>) attributes {dimension_semantics = [#tpu.dimension_semantics<parallel>, #tpu.dimension_semantics<parallel>, #tpu.dimension_semantics<arbitrary>], iteration_bounds = array<i64: 2, 1, 1>, scalar_prefetch = 0 : i64, scratch_operands = 0 : i64, tpu.core_type = #tpu.core_type<tc>, window_params = [{transform_indices = @transform_0, window_bounds = array<i64: 8, 128>}, {transform_indices = @transform_1, window_bounds = array<i64: 1, 128, 256>}, {pipeline_mode = #tpu.pipeline_mode<synchronous>, transform_indices = @transform_2, window_bounds = array<i64: 8, 1>}, {transform_indices = @transform_3, window_bounds = array<i64: 1, 8, 256>}]} {
    %c0 = arith.constant 0 : index
    %c0_0 = arith.constant 0 : index
    %0 = vector.load %arg3[%c0, %c0_0] : memref<8x128xbf16, #tpu.memory_space<vmem>>, vector<8x128xbf16>
    %c0_1 = arith.constant 0 : index
    %c0_2 = arith.constant 0 : index
    %c0_3 = arith.constant 0 : index
    %1 = vector.load %arg4[%c0_1, %c0_2, %c0_3] : memref<1x128x256xbf16, #tpu.memory_space<vmem>>, vector<1x128x256xbf16>
    %2 = vector.shape_cast %1 : vector<1x128x256xbf16> to vector<128x256xbf16>
    %cst = arith.constant dense<0.000000e+00> : vector<8x256xf32>
    %3 = tpu.matmul %0, %2, %cst {dimension_numbers = #tpu.dot_dimension_numbers<[1], [0], [0], [1], [0, 0, 1, 1], [], []>} : vector<8x128xbf16>, vector<128x256xbf16>, vector<8x256xf32> -> vector<8x256xf32>
    %c0_4 = arith.constant 0 : index
    %c0_5 = arith.constant 0 : index
    %4 = vector.load %arg5[%c0_4, %c0_5] : memref<8x1xf32, #tpu.memory_space<vmem>>, vector<8x1xf32>
    %5 = vector.broadcast %4 : vector<8x1xf32> to vector<8x256xf32>
    %6 = arith.addf %3, %5 : vector<8x256xf32>
    %c0_6 = arith.constant 0 : index
    %c0_7 = arith.constant 0 : index
    %c0_8 = arith.constant 0 : index
    %7 = vector.load %arg6[%c0_6, %c0_7, %c0_8] : memref<1x8x256xf32, #tpu.memory_space<vmem>>, vector<1x8x256xf32>
    %8 = vector.shape_cast %7 : vector<1x8x256xf32> to vector<8x256xf32>
    %9 = vector.shape_cast %6 : vector<8x256xf32> to vector<1x8x256xf32>
    tpu.vector_store %arg6[%c0_6, %c0_7, %c0_8], %9 {strides = array<i32>} : memref<1x8x256xf32, #tpu.memory_space<vmem>>, vector<1x8x256xf32>,
    return
  }
  func.func @transform_0(%arg0: i32, %arg1: i32, %arg2: i32) -> (i32, i32) {
    %c0_i32 = arith.constant 0 : i32
    %c0_i32_0 = arith.constant 0 : i32
    return %c0_i32, %arg2 : i32, i32
  }
  func.func @transform_1(%arg0: i32, %arg1: i32, %arg2: i32) -> (i32, i32, i32) {
    %c0_i32 = arith.constant 0 : i32
    return %arg0, %arg2, %arg1 : i32, i32, i32
  }
  func.func @transform_2(%arg0: i32, %arg1: i32, %arg2: i32) -> (i32, i32) {
    %c0_i32 = arith.constant 0 : i32
    %c0_i32_0 = arith.constant 0 : i32
    %c0_i32_1 = arith.constant 0 : i32
    return %c0_i32, %c0_i32_0 : i32, i32
  }
  func.func @transform_3(%arg0: i32, %arg1: i32, %arg2: i32) -> (i32, i32, i32) {
    %c0_i32 = arith.constant 0 : i32
    %c0_i32_0 = arith.constant 0 : i32
    return %arg0, %c0_i32, %arg1 : i32, i32, i32
  }
}

</mosaic_0001>

<bundles_post_ra>
// kernel: tpu_custom_call.1
= control target key start
LH: loop header
LB: loop body
LE: loop exit
PB: predicated region body
PF: predicated region fallthrough
CT: control target
= control target key end

     0   :  { %8 = vsyncpa [#allocation3], 0  ;;  %s968_s0 = inlined_call_operand.vmem [shape: bf16[8,128], index: 0, kind: input, shape index: {}]   ;;  %s969_s1 = inlined_call_operand.hbm [shape: bf16[2,128,256], index: 1, kind: input, shape index: {}]   ;;  %s970_s2 = inlined_call_operand.vmem [shape: f32[8,1], index: 2, kind: input, shape index: {}]   ;;  %s971_s3 = inlined_call_operand.hbm [shape: f32[2,8,256], index: 3, kind: output, shape index: {}]  }
   0x1   :  { %10 = vsyncpa [#allocation3 + $0x1], 0 }
   0x2   :  { %11 = vsyncpa [#allocation4], 0 }
   0x3   :  { %13 = vsyncpa [#allocation4 + $0x1], 0  ;;  %s770_s12 = smov 0   ;;  %s772_s13 = smov 0  }
   0x4   :  { %s774_s14 = smov 0   ;;  %s776_s15 = smov 0  }
   0x5   :  { %s778_s16 = smov 0   ;;  %s780_s17 = smov 0  }
   0x6 LB: > { %s507_s18 = sadd.s32 4294967295, %s743_s17   ;;  %s508_s19 = sadd.s32 4294967294, %s743_s17   ;;  %s743_s17 = sphi %s780_s17, %s19_s17   ;;  %s739_s16 = sphi %s778_s16, %s986_s16   ;;  %s735_s15 = sphi %s776_s15, %s985_s15   ;;  %s731_s14 = sphi %s774_s14, %s984_s14   ;;  %s727_s13 = sphi %s772_s13, %s983_s13   ;;  %s723_s12 = sphi %s770_s12, %s982_s12  }
   0x7   : > { %s38_s20 = sadd.s32 1, %s739_s16  ;;  %s75_s21 = sadd.s32 1, %s731_s14 }
   0x8   : > { %p40_p0 = scmp.ge.s32.totalorder %s38_s20, 2  ;;  %p82_p1 = scmp.ne.s32.totalorder %s731_s14, %s727_s13 }
   0x9   : > { %p83_p2 = scmp.eq.s32.totalorder %s743_s17, 0  ;;  %p88_p3 = scmp.ne.s32.totalorder %s727_s13, %s723_s12 }
   0xa   : > { %s988_s20 = smov (%p40_p0, %s38_s20), 0  ;;  %p89_p5 = scmp.eq.s32.totalorder %s507_s18, 0 }
   0xb   : > { %p811_p4 = por %p83_p2, %p82_p1  ;;  %s68_s23 = ssub.s32 %s739_s16, %s988_s20 }
   0xc   : > { %p135_p6 = scmp.eq.s32.totalorder %s507_s18, 1  ;;  %p73_p7 = scmp.eq.s32.totalorder %s68_s23, 0 }
   0xd   : > { %p817_p8 = por %p89_p5, %p88_p3  ;;  %p141_p10 = scmp.eq.s32.totalorder %s508_s19, 1 }
   0xe   : > { %p821_p9 = por %p135_p6, %p82_p1  ;;  %p553_p13 = scmp.lt.s32.totalorder %s743_s17, 2 }
   0xf   : > { %s826_s26 = scalar_select %p73_p7, %s731_s14, %s75_s21  }
  0x10   : > { %s975_s25 = scalar_select %p821_p9, 1, 0 }
  0x11   : > { %p828_p11 = por %p141_p10, %p88_p3  ;;  %s171_s28 = sand.u32 1, %s731_s14  }
  0x12   : > { %s512_s29 = sshll.u32 %s171_s28, 7  ;;  %s539_s30 = sshll.u32 %s739_s16, 11 }
  0x13   : > { %s976_s27 = scalar_select %p828_p11, 1, 0 }
  0x14   : > { %s839_s6 = scalar_lea.hbm %s969_s1, %s539_s30  ;;  %s175_s7 = scalar_lea.vmem [#allocation2], %s512_s29 }
  0x15   : > { %s187_s8 = sshll.u32 %s175_s7, 4  ;;  %p845_p0 = pnand %p553_p13, %p811_p4  ;;  %s841_s8 = int_to_ptr.vmem [resolvable:$true] %s187_s8 }
  0x16   : > { %s850_s10 = scalar_lea.sflag [#allocation3], %s171_s28  ;;  %s631_s11 = scalar_lea.hbm %s839_s6, 2048 }
  0x17   : > { %p632_p2 = scmp.ne.s32.totalorder %s839_s6, %s631_s11  ;;  %p633_p3 = pneg %p845_p0 }
  0x18   : > { %s636_s21 = scalar_lea.hbm %s969_s1, 4096  ;;  %p637_p4 = scmp.lt.u32.totalorder %s839_s6, %s969_s1 }
  0x19   : > { %p634_p5 = pnand %p633_p3, %p632_p2  ;;  %p638_p7 = scmp.lt.u32.totalorder %s636_s21, %s631_s11 }
  0x1a   : > { %p640_p13 = scmp.lt.u32.totalorder %s631_s11, %s839_s6 }
  0x1b   : > { %p635_p6 = pneg %p634_p5  ;;  %p639_p10 = por %p638_p7, %p637_p4 }
  0x1d   : > { %p641_p12 = por %p640_p13, %p639_p10 }
  0x1f   : > { %p642_p1 = pnand %p641_p12, %p635_p6 }
  0x21   : > { %645 = shalt.err (!%p642_p1)
}
  0x22   : > { %s646_s28 = scalar_lea.vmem %s841_s8, 2048  ;;  %s745_s29 = smov [#allocation2]  }
  0x23   : > { %p647_p2 = scmp.ne.s32.totalorder %s841_s8, %s646_s28  ;;  %s651_s30 = sshll.u32 %s745_s29, 4  ;;  %s652_s30 = int_to_ptr.vmem [resolvable:$false] %s651_s30 }
  0x24   : > { %s653_s4 = scalar_lea.vmem %s652_s30, 4096  ;;  %p654_p9 = scmp.lt.s32.totalorder %s841_s8, %s652_s30 }
  0x25   : > { %p649_p5 = pnand %p647_p2, %p633_p3  ;;  %p655_p4 = scmp.lt.s32.totalorder %s653_s4, %s646_s28 }
  0x27   : > { %p650_p11 = pneg %p649_p5  ;;  %p656_p7 = por %p655_p4, %p654_p9 }
  0x29   : > { %p657_p10 = pnand %p656_p7, %p650_p11 }
  0x2b   : > { %660 = shalt.err (!%p657_p10)
}
  0x2c   : > { %s746_s5 = smov 128   ;;  %s747_s7 = smov 8  }
  0x2d   : > { %548 = dma.hbm_to_vmem [thread:$0]  (!%p845_p0), %s839_s6, 2048, %s841_s8, %s850_s10, %s746_s5, %s746_s5, %s747_s7  }
  0x2e   : > { %p195_p12 = scmp.lt.s32.totalorder %s743_s17, 3  ;;  %p978_p1 = scmp.ge.s32.totalorder %s743_s17, 1 }
  0x30   : > { %p196_p3 = pnand %p978_p1, %p195_p12 }
  0x31   : > { %s882_s11 = sand.u32 (!%p196_p3), 1, %s727_s13  }
  0x32   : > { %199 = sbr.rel (%p196_p3) target bundleno = 321 (0x141), region = 32  ;;  %s516_s18 = sshll.u32 (!%p196_p3), %s882_s11, 7 }
  0x33   : > { %s202_s19 = scalar_lea.sflag (!%p196_p3), [#allocation3], %s882_s11  ;;  %s886_s21 = scalar_lea.vmem (!%p196_p3), [#allocation2], %s516_s18 }
  0x39   : > { %714 = dma.done.wait (%p817_p8), %s202_s19, 2048  }
  0x3a   : > { %716 = vsyncadd (%p817_p8), %s202_s19, 4294965248  ;;  %v748_v0 = vmov 0   ;;  %v607_v1 = vld [vmem:[%s886_s21 + $0x4] ss:$8 sps:$4 sm:$0xff]   ;;  %v609_v2 = vld [vmem:[%s886_s21] ss:$8 sps:$4 sm:$0xff]  }
  0x3b   : > { %375 = vmatprep.mubr.bf16.mxu0 %v748_v0  ;;  %606 = vset.pattern.permute.xlu0 %v748_v0  ;;  %v610_v3 = vld [vmem:[%s886_s21 + $0x14] ss:$8 sps:$4 sm:$0xff]   ;;  %v612_v4 = vld [vmem:[%s886_s21 + $0x10] ss:$8 sps:$4 sm:$0xff]   ;;  %v613_v5 = vld [vmem:[%s886_s21 + $0x24] ss:$8 sps:$4 sm:$0xff]  }
  0x3c   : > { %343 = vmatprep.subr.bf16.mxu0 %v607_v1  ;;  %v615_v6 = vld [vmem:[%s886_s21 + $0x20] ss:$8 sps:$4 sm:$0xff]   ;;  %v616_v7 = vld [vmem:[%s886_s21 + $0x34] ss:$8 sps:$4 sm:$0xff]   ;;  %v618_v8 = vld [vmem:[%s886_s21 + $0x30] ss:$8 sps:$4 sm:$0xff]  }
  0x3d   : > { %344 = vmatpush1.bf16.msra.mxu0 %v609_v2  ;;  %v257_v9 = vld [vmem:[%s970_s2] sm:$0xff]  ;;  %v622_v12 = vld [vmem:[%s886_s21 + $0x54] ss:$8 sps:$4 sm:$0xff]   ;;  %v624_v13 = vld [vmem:[%s886_s21 + $0x50] ss:$8 sps:$4 sm:$0xff]   ;;  %s517_s10 = sshll.u32 %s882_s11, 4 }
  0x3e   : > { %345 = vmatprep.subr.bf16.mxu0 %v610_v3  ;;  %v619_v10 = vld [vmem:[%s886_s21 + $0x44] ss:$8 sps:$4 sm:$0xff]   ;;  %260 = vperm.xlu0 %606, %v257_v9   ;;  %v621_v11 = vld [vmem:[%s886_s21 + $0x40] ss:$8 sps:$4 sm:$0xff]   ;;  %v628_v16 = vld [vmem:[%s886_s21 + $0x74] ss:$8 sps:$4 sm:$0xff]  }
  0x3f   : > { %v625_v14 = vld [vmem:[%s886_s21 + $0x64] ss:$8 sps:$4 sm:$0xff]   ;;  %v627_v15 = vld [vmem:[%s886_s21 + $0x60] ss:$8 sps:$4 sm:$0xff]   ;;  %v630_v17 = vld [vmem:[%s886_s21 + $0x70] ss:$8 sps:$4 sm:$0xff]  }
  0x40   : > { %v240_v18 = vld [vmem:[%s968_s0] sm:$0xf]  ;;  %s540_s22 = sshll.u32 %s735_s15, 8  ;;  %s231_s23 = scalar_lea.vmem [#allocation5], %s517_s10 }
  0x41   : > { %346 = vmatpush1.bf16.msra.mxu0 %v612_v4  ;;  %s403_s28 = sshll.u32 %s231_s23, 4  ;;  %s919_s4 = scalar_lea.hbm %s971_s3, %s540_s22  ;;  %s921_s28 = int_to_ptr.vmem [resolvable:$true] %s403_s28 }
  0x42   : > { %347 = vmatprep.subr.bf16.mxu0 %v613_v5  ;;  %s387_s15 = scalar_lea.sflag [#allocation4], %s882_s11  ;;  %s661_s5 = scalar_lea.vmem %s921_s28, 256 }
  0x43   : > { %p662_p8 = scmp.ne.s32.totalorder %s921_s28, %s661_s5  ;;  %p979_p9 = scmp.ne.s32.totalorder %s975_s25, 0 }
  0x44   : > { %s749_s7 = smov [#allocation5]  }
  0x45   : > { %348 = vmatpush1.bf16.msra.mxu0 %v615_v6  ;;  %p663_p11 = pnand %p662_p8, %p979_p9  ;;  %s665_s18 = sshll.u32 %s749_s7, 4  ;;  %s666_s18 = int_to_ptr.vmem [resolvable:$false] %s665_s18 }
  0x46   : > { %349 = vmatprep.subr.bf16.mxu0 %v616_v7  ;;  %s667_s19 = scalar_lea.vmem %s666_s18, 512  ;;  %p668_p6 = scmp.lt.s32.totalorder %s921_s28, %s666_s18 }
  0x47   : > { %p664_p0 = pneg %p663_p11  ;;  %p669_p13 = scmp.lt.s32.totalorder %s667_s19, %s661_s5 }
  0x49   : > { %350 = vmatpush1.bf16.msra.mxu0 %v618_v8  ;;  %p670_p2 = por %p669_p13, %p668_p6 }
  0x4a   : > { %351 = vmatprep.subr.bf16.mxu0 %v619_v10 }
  0x4b   : > { %p671_p5 = pnand %p670_p2, %p664_p0 }
  0x4d   : > { %352 = vmatpush1.bf16.msra.mxu0 %v621_v11 }
  0x4e   : > { %353 = vmatprep.subr.bf16.mxu0 %v622_v12 }
  0x51   : > { %354 = vmatpush1.bf16.msra.mxu0 %v624_v13 }
  0x52   : > { %355 = vmatprep.subr.bf16.mxu0 %v625_v14 }
  0x55   : > { %356 = vmatpush1.bf16.msra.mxu0 %v627_v15 }
  0x56   : > { %357 = vmatprep.subr.bf16.mxu0 %v628_v16 }
  0x59   : > { %358 = vmatpush1.bf16.msra.mxu0 %v630_v17 }
  0x5c   : > { %376 = vmatmul.mubr.bf16.vlgmr.msra.gmra.mrb[0].mxu0 %v240_v18 }
  0xbd   : > { %v261_v19 = vpop.permute.xlu0 %260 }
 0x12f   : > { %v377_v20 = vpop.f32.mrb[0].mxu0 }
 0x130   : > { %v378_v21 = vadd.f32 %v377_v20, %v261_v19  ;;  %v379_v22 = vpop.f32.mrb[1].mxu0 }
 0x131   : > { %v380_v23 = vadd.f32 %v379_v22, %v261_v19  ;;  %v381_v24 = vpop.f32.mrb[2].mxu0 }
 0x132   : > { %384 = vst [vmem:[%s231_s23] sm:$0xff] %v378_v21  ;;  %v382_v25 = vpop.f32.mrb[3].mxu0 }
 0x133   : > { %385 = vst [vmem:[%s231_s23 + $0x8] sm:$0xff] %v380_v23 }
 0x134   : > { %674 = shalt.err (!%p671_p5)
}
 0x135   : > { %s675_s11 = scalar_lea.hbm %s919_s4, 256  ;;  %s679_s6 = scalar_lea.hbm %s971_s3, 512 }
 0x136   : > { %p676_p4 = scmp.ne.s32.totalorder %s919_s4, %s675_s11  ;;  %p680_p12 = scmp.lt.u32.totalorder %s919_s4, %s971_s3 }
 0x137   : > { %p681_p1 = scmp.lt.u32.totalorder %s679_s6, %s675_s11  ;;  %p683_p8 = scmp.lt.u32.totalorder %s675_s11, %s919_s4 }
 0x138   : > { %p677_p7 = pnand %p676_p4, %p979_p9 }
 0x139   : > { %p682_p3 = por %p681_p1, %p680_p12 }
 0x13a   : > { %p678_p10 = pneg %p677_p7 }
 0x13b   : > { %p684_p11 = por %p683_p8, %p682_p3 }
 0x13d   : > { %p685_p0 = pnand %p684_p11, %p678_p10 }
 0x13f   : > { %688 = shalt.err (!%p685_p0)
}
 0x140   : > { %543 = dma.vmem_to_hbm [thread:$0]  (%p979_p9), %s921_s28, 256, %s919_s4, %s387_s15  }
 0x141 PF: > { %s415_s10 = sand.u32 1, %s723_s12   ;;  %p980_p6 = scmp.ne.s32.totalorder %s976_s27, 0 }
 0x142   : > { %p981_p13 = scmp.ge.s32.totalorder %s743_s17, 2  ;;  %s416_s22 = scalar_lea.sflag [#allocation4], %s415_s10 }
 0x144   : > { %p550_p2 = pnand %p981_p13, %p980_p6 }
 0x146   : > { %718 = dma.done.wait (!%p550_p2), %s416_s22, 256  }
 0x147   : > { %720 = vsyncadd (!%p550_p2), %s416_s22, 4294967040  ;;  %s19_s17 = sadd.s32 1, %s743_s17   ;;  %s982_s12 = smov %s727_s13 }
 0x148   : > { %p16_p5 = scmp.ge.s32.totalorder %s19_s17, 4   ;;  %s983_s13 = smov %s731_s14 }
 0x149   : > { %s984_s14 = smov %s826_s26  ;;  %s985_s15 = smov %s739_s16 }
 0x14a   : > { %s986_s16 = smov %s988_s20  ;;  %18 = sbr.rel (!%p16_p5) target bundleno = 6 (0x6), region = 80 }
 0x151   :  { %421 = vsyncpa [#allocation3], 1 }
 0x152   :  { %423 = vsyncpa [#allocation3 + $0x1], 1 }
 0x153   :  { %424 = vsyncpa [#allocation4], 1 }
 0x154   :  { %426 = vsyncpa [#allocation4 + $0x1], 1 }

</bundles_post_ra>
